<compile_context>
chip_gen: v5e
topology: v5e:2x2
jax: 0.10.0
libtpu: 0.0.40
codegen_flags: <defaults>
</compile_context>

<pallas_src>
import functools

import jax
import jax.numpy as jnp
from jax.experimental import pallas as pl
from jax.experimental.pallas import tpu as pltpu

_LANE = 128          # lane-tile width; packed weight segments start at 0/128/256
_SLAB_LANES = 3 * _LANE


def _softmax_rows(x):
    """softmax(tanh(x)) over axis 0 == f.softmax(torch.tanh(x), dim=0).

    tanh bounds the logits to [-1, 1], so no max-shift is needed for
    stability (perf review).  Exact divide (correctness fix)."""
    e = jnp.exp(jnp.tanh(x))
    return e / jnp.sum(e, axis=0, keepdims=True)


def explorer_kernel(data_ref, w_ref, out_ref):
    """data_ref: (N+1, D)  rows 0..N-1 = memory, row N = state.
    w_ref:    (2D+2, 384) packed weights (see pack_params).
    out_ref:  (H+1, D)    rows 0..H-1 = new_states, row H = priorities."""
    N = data_ref.shape[0] - 1
    D = data_ref.shape[1]
    H = out_ref.shape[0] - 1

    mem = data_ref[:N, :]                       # (N, D)
    st = data_ref[N:N + 1, :]                   # (1, D)

    w_mem = w_ref[0:D, :]                       # (D, 384) memory-half weights
    w_state = w_ref[D:2 * D, :]                 # (D, 384) state-half weights
    bias = w_ref[2 * D:2 * D + 1, :]            # (1, 384) packed biases
    wp_row = w_ref[2 * D + 1:2 * D + 2, 0:D]    # (1, D)   prune mem-half as a row

    # One fused state-side projection + bias for all three linears:
    # cat([x, state]) @ W == x @ W[:D] + state @ W[D:]  (weight-split trick);
    # the state half + bias is identical for every row, so compute it once.
    sb = jnp.dot(st, w_state, preferred_element_type=jnp.float32) + bias  # (1,384)

    # ---- attention_MISD(memory, state, self.query) ----
    logits = (jnp.dot(mem, w_mem[:, 0:H], preferred_element_type=jnp.float32)
              + sb[:, 0:H])                     # (N, H)
    wq = _softmax_rows(logits)                  # (N, H)
    # weightings.T @ memory without materializing a transpose.
    active = jax.lax.dot_general(
        wq, mem, dimension_numbers=(((0,), (0,)), ((), ())),
        preferred_element_type=jnp.float32)     # (H, D)

    # ---- self.read(cat([active, state], -1)) -> ReLU(Linear) ----
    ns = jnp.maximum(
        jnp.dot(active, w_mem[:, _LANE:_LANE + D],
                preferred_element_type=jnp.float32)
        + sb[:, _LANE:_LANE + D], 0.0)          # (H, D)
    out_ref[0:H, :] = ns

    # ---- attention(new_states, state, self.prune) ----
    # 1-lane-wide dots done on VPU (multiply) + XLU (reduce) instead of two
    # serial MXU round trips (perf review).
    logits2 = (jnp.sum(ns * wp_row, axis=1, keepdims=True)
               + sb[:, 2 * _LANE:2 * _LANE + 1])            # (H, 1)
    w2 = _softmax_rows(logits2)                              # (H, 1)
    out_ref[H:H + 1, :] = jnp.sum(w2 * ns, axis=0, keepdims=True)  # (1, D)


def pack_params(params, *, heads, dimensions):
    """One-time packing of torch-layout weights (runs OUTSIDE the hot path).

    Layout of the (2D+2, 384) slab (segments lane-tile aligned at 0/128/256):
      rows [0:D]    memory-half weights: query @ lanes [0:H], read @ [128:128+D]
      rows [D:2D]   state-half weights:  query, read, prune(@ lane 256)
      row  [2D]     biases at the same lane positions
      row  [2D+1]   prune memory-half weight stored as a row at lanes [0:D]
    """
    D, H = dimensions, heads
    assert H <= _LANE and D <= _LANE
    # torch Linear weight is (out, in); transpose -> (in, out); split "in" into
    # memory half (first D rows) and state half (last D rows).
    wq = jnp.asarray(params["query_w"], jnp.float32).T   # (2D, H)
    wr = jnp.asarray(params["read_w"], jnp.float32).T    # (2D, D)
    wp = jnp.asarray(params["prune_w"], jnp.float32).T   # (2D, 1)
    bq = jnp.asarray(params["query_b"], jnp.float32)     # (H,)
    br = jnp.asarray(params["read_b"], jnp.float32)      # (D,)
    bp = jnp.asarray(params["prune_b"], jnp.float32)     # (1,)

    slab = jnp.zeros((2 * D + 2, _SLAB_LANES), jnp.float32)
    # memory-half
    slab = slab.at[0:D, 0:H].set(wq[:D])
    slab = slab.at[0:D, _LANE:_LANE + D].set(wr[:D])
    # state-half
    slab = slab.at[D:2 * D, 0:H].set(wq[D:])
    slab = slab.at[D:2 * D, _LANE:_LANE + D].set(wr[D:])
    slab = slab.at[D:2 * D, 2 * _LANE:2 * _LANE + 1].set(wp[D:])
    # biases
    slab = slab.at[2 * D, 0:H].set(bq)
    slab = slab.at[2 * D, _LANE:_LANE + D].set(br)
    slab = slab.at[2 * D, 2 * _LANE].set(bp[0])
    # prune memory-half as a row (VPU-friendly, avoids in-kernel transpose)
    slab = slab.at[2 * D + 1, 0:D].set(wp[:D, 0])
    return {"w_slab": slab}


def _explorer_call(B, N, H, D):
    """Build the pallas_call for B independent (state, memory) pairs."""
    return pl.pallas_call(
        explorer_kernel,
        out_shape=jax.ShapeDtypeStruct((B, H + 1, D), jnp.float32),
        grid=(B,),
        in_specs=[
            pl.BlockSpec((None, N + 1, D), lambda b: (b, 0, 0)),
            pl.BlockSpec((2 * D + 2, _SLAB_LANES), lambda b: (0, 0)),
        ],
        out_specs=pl.BlockSpec((None, H + 1, D), lambda b: (b, 0, 0)),
        compiler_params=pltpu.CompilerParams(
            dimension_semantics=("parallel",)),
    )


@functools.partial(jax.jit, static_argnames=("heads", "dimensions"))
def explorer_forward(state, memory, packed, *, heads, dimensions):
    """state: (D,) f32, memory: (N, D) f32, packed: pack_params() output.
    Returns (new_states (H, D), priorities (1, D))."""
    D, H = dimensions, heads
    N = memory.shape[0]
    data = jnp.concatenate(
        [memory.astype(jnp.float32),
         state.reshape(1, D).astype(jnp.float32)], axis=0)[None]   # (1, N+1, D)
    out = _explorer_call(1, N, H, D)(data, packed["w_slab"])        # (1, H+1, D)
    return out[0, :H, :], out[0, H:H + 1, :]


@functools.partial(jax.jit, static_argnames=("heads", "dimensions"))
def explorer_forward_batched(states, memories, packed, *, heads, dimensions):
    """states: (B, D), memories: (B, N, D) -> ((B, H, D), (B, 1, D)).
    Batch axis is a 'parallel' grid axis (uses both TCs on v7x)."""
    D, H = dimensions, heads
    B, N, _ = memories.shape
    data = jnp.concatenate(
        [memories.astype(jnp.float32),
         states[:, None, :].astype(jnp.float32)], axis=1)           # (B, N+1, D)
    out = _explorer_call(B, N, H, D)(data, packed["w_slab"])        # (B, H+1, D)
    return out[:, :H, :], out[:, H:H + 1, :]


def init_params(key, dimensions, heads):
    """Deterministic init mimicking torch.nn.Linear (uniform +-1/sqrt(fan_in))."""
    D, H = dimensions, heads
    ks = jax.random.split(key, 6)
    bound = 1.0 / jnp.sqrt(2.0 * D)
    u = lambda k, shape: jax.random.uniform(k, shape, jnp.float32, -bound, bound)
    return {
        "query_w": u(ks[0], (H, 2 * D)),  # torch layout (out, in)
        "query_b": u(ks[1], (H,)),
        "read_w":  u(ks[2], (D, 2 * D)),
        "read_b":  u(ks[3], (D,)),
        "prune_w": u(ks[4], (1, 2 * D)),
        "prune_b": u(ks[5], (1,)),
    }


def explorer_reference(state, memory, params, *, heads, dimensions):
    """Pure-JAX reference mirroring the torch module, for correctness check."""
    D, H = dimensions, heads
    hp = jax.lax.Precision.HIGHEST

    def attention(data, st, w, b):
        n = data.shape[0]
        dataset = jnp.concatenate([data, jnp.broadcast_to(st, (n, D))], axis=1)
        logits = jnp.dot(dataset, w.T, precision=hp) + b
        wgt = jax.nn.softmax(jnp.tanh(logits), axis=0)
        return jnp.dot(wgt.T, data, precision=hp)

    active = attention(memory, state, params["query_w"], params["query_b"])  # (H, D)
    active = jnp.concatenate([active, jnp.broadcast_to(state, (H, D))], axis=1)
    new_states = jax.nn.relu(
        jnp.dot(active, params["read_w"].T, precision=hp) + params["read_b"])  # (H, D)
    priorities = attention(new_states, state, params["prune_w"], params["prune_b"])
    return new_states, priorities


if __name__ == "__main__":
    dimensions, heads, n_mem = 32, 8, 16

    key = jax.random.PRNGKey(0)
    k_state, k_mem, k_params, k_batch = jax.random.split(key, 4)
    state = jax.random.normal(k_state, (dimensions,), jnp.float32)
    memory = jax.random.normal(k_mem, (n_mem, dimensions), jnp.float32)
    params = init_params(k_params, dimensions, heads)

    # Pre-pack once, outside the per-call hot path.
    packed = pack_params(params, heads=heads, dimensions=dimensions)

    # ---- single-instance forward (matches the torch module's forward) ----
    new_states, priorities = explorer_forward(
        state, memory, packed, heads=heads, dimensions=dimensions)
    jax.block_until_ready((new_states, priorities))

    ref_ns, ref_pr = explorer_reference(
        state, memory, params, heads=heads, dimensions=dimensions)
    assert new_states.shape == (heads, dimensions)
    assert priorities.shape == (1, dimensions)
    assert jnp.allclose(new_states, ref_ns, atol=1e-3, rtol=1e-3)
    assert jnp.allclose(priorities, ref_pr, atol=1e-3, rtol=1e-3)

    # ---- batched path (the real throughput lever per the perf review) ----
    B = 4
    kb1, kb2 = jax.random.split(k_batch)
    states_b = jax.random.normal(kb1, (B, dimensions), jnp.float32)
    mems_b = jax.random.normal(kb2, (B, n_mem, dimensions), jnp.float32)
    ns_b, pr_b = explorer_forward_batched(
        states_b, mems_b, packed, heads=heads, dimensions=dimensions)
    jax.block_until_ready((ns_b, pr_b))
    for i in range(B):
        rns, rpr = explorer_reference(
            states_b[i], mems_b[i], params, heads=heads, dimensions=dimensions)
        assert jnp.allclose(ns_b[i], rns, atol=1e-3, rtol=1e-3)
        assert jnp.allclose(pr_b[i], rpr, atol=1e-3, rtol=1e-3)

    print("KERNEL_OK")
</pallas_src>

<mosaic_0001>
module attributes {stable_mosaic.version = 11 : i64} {
  func.func @explorer_kernel(%arg0: i32, %arg1: memref<1x17x32xf32, #tpu.memory_space<vmem>>, %arg2: memref<66x384xf32, #tpu.memory_space<vmem>>, %arg3: memref<1x9x32xf32, #tpu.memory_space<vmem>>) attributes {dimension_semantics = [#tpu.dimension_semantics<parallel>], iteration_bounds = array<i64: 1>, scalar_prefetch = 0 : i64, scratch_operands = 0 : i64, tpu.core_type = #tpu.core_type<tc>, window_params = [{transform_indices = @transform_0, window_bounds = array<i64: 1, 17, 32>}, {pipeline_mode = #tpu.pipeline_mode<synchronous>, transform_indices = @transform_1, window_bounds = array<i64: 66, 384>}, {transform_indices = @transform_2, window_bounds = array<i64: 1, 9, 32>}]} {
    %c0 = arith.constant 0 : index
    %c0_0 = arith.constant 0 : index
    %c0_1 = arith.constant 0 : index
    %0 = vector.load %arg1[%c0, %c0_0, %c0_1] : memref<1x17x32xf32, #tpu.memory_space<vmem>>, vector<1x16x32xf32>
    %1 = vector.shape_cast %0 : vector<1x16x32xf32> to vector<16x32xf32>
    %c0_2 = arith.constant 0 : index
    %c16 = arith.constant 16 : index
    %c0_3 = arith.constant 0 : index
    %2 = vector.load %arg1[%c0_2, %c16, %c0_3] : memref<1x17x32xf32, #tpu.memory_space<vmem>>, vector<1x1x32xf32>
    %3 = vector.shape_cast %2 : vector<1x1x32xf32> to vector<1x32xf32>
    %c0_4 = arith.constant 0 : index
    %c0_5 = arith.constant 0 : index
    %4 = vector.load %arg2[%c0_4, %c0_5] : memref<66x384xf32, #tpu.memory_space<vmem>>, vector<32x384xf32>
    %c32 = arith.constant 32 : index
    %c0_6 = arith.constant 0 : index
    %5 = vector.load %arg2[%c32, %c0_6] : memref<66x384xf32, #tpu.memory_space<vmem>>, vector<32x384xf32>
    %c64 = arith.constant 64 : index
    %c0_7 = arith.constant 0 : index
    %6 = vector.load %arg2[%c64, %c0_7] : memref<66x384xf32, #tpu.memory_space<vmem>>, vector<1x384xf32>
    %c65 = arith.constant 65 : index
    %c0_8 = arith.constant 0 : index
    %7 = vector.load %arg2[%c65, %c0_8] : memref<66x384xf32, #tpu.memory_space<vmem>>, vector<1x32xf32>
    %cst = arith.constant dense<0.000000e+00> : vector<1x384xf32>
    %8 = tpu.matmul %3, %5, %cst {dimension_numbers = #tpu.dot_dimension_numbers<[1], [0], [0], [1], [0, 0, 1, 1], [], []>} : vector<1x32xf32>, vector<32x384xf32>, vector<1x384xf32> -> vector<1x384xf32>
    %9 = arith.addf %8, %6 : vector<1x384xf32>
    %10 = vector.extract_strided_slice %4 {offsets = [0, 0], sizes = [32, 8], strides = [1, 1]} : vector<32x384xf32> to vector<32x8xf32>
    %cst_9 = arith.constant dense<0.000000e+00> : vector<16x8xf32>
    %11 = tpu.matmul %1, %10, %cst_9 {dimension_numbers = #tpu.dot_dimension_numbers<[1], [0], [0], [1], [0, 0, 1, 1], [], []>} : vector<16x32xf32>, vector<32x8xf32>, vector<16x8xf32> -> vector<16x8xf32>
    %12 = vector.extract_strided_slice %9 {offsets = [0, 0], sizes = [1, 8], strides = [1, 1]} : vector<1x384xf32> to vector<1x8xf32>
    %13 = vector.broadcast %12 : vector<1x8xf32> to vector<16x8xf32>
    %14 = arith.addf %11, %13 : vector<16x8xf32>
    %15 = math.tanh %14 : vector<16x8xf32>
    %16 = math.exp %15 : vector<16x8xf32>
    %cst_10 = arith.constant dense<0.000000e+00> : vector<8xf32>
    %17 = vector.multi_reduction <add>, %16, %cst_10 [0] : vector<16x8xf32> to vector<8xf32>
    %18 = vector.shape_cast %17 : vector<8xf32> to vector<1x8xf32>
    %19 = vector.broadcast %18 : vector<1x8xf32> to vector<16x8xf32>
    %20 = arith.divf %16, %19 : vector<16x8xf32>
    %cst_11 = arith.constant dense<0.000000e+00> : vector<8x32xf32>
    %21 = tpu.matmul %20, %1, %cst_11 {dimension_numbers = #tpu.dot_dimension_numbers<[0], [0], [1], [1], [0, 1, 1, 1], [], []>} : vector<16x8xf32>, vector<16x32xf32>, vector<8x32xf32> -> vector<8x32xf32>
    %22 = vector.extract_strided_slice %4 {offsets = [0, 128], sizes = [32, 32], strides = [1, 1]} : vector<32x384xf32> to vector<32x32xf32>
    %cst_12 = arith.constant dense<0.000000e+00> : vector<8x32xf32>
    %23 = tpu.matmul %21, %22, %cst_12 {dimension_numbers = #tpu.dot_dimension_numbers<[1], [0], [0], [1], [0, 0, 1, 1], [], []>} : vector<8x32xf32>, vector<32x32xf32>, vector<8x32xf32> -> vector<8x32xf32>
    %24 = vector.extract_strided_slice %9 {offsets = [0, 128], sizes = [1, 32], strides = [1, 1]} : vector<1x384xf32> to vector<1x32xf32>
    %25 = vector.broadcast %24 : vector<1x32xf32> to vector<8x32xf32>
    %26 = arith.addf %23, %25 : vector<8x32xf32>
    %cst_13 = arith.constant 0.000000e+00 : f32
    %27 = vector.broadcast %cst_13 : f32 to vector<8x32xf32>
    %28 = arith.maximumf %26, %27 : vector<8x32xf32>
    %c0_14 = arith.constant 0 : index
    %c0_15 = arith.constant 0 : index
    %c0_16 = arith.constant 0 : index
    %29 = vector.load %arg3[%c0_14, %c0_15, %c0_16] : memref<1x9x32xf32, #tpu.memory_space<vmem>>, vector<1x8x32xf32>
    %30 = vector.shape_cast %29 : vector<1x8x32xf32> to vector<8x32xf32>
    %31 = vector.shape_cast %28 : vector<8x32xf32> to vector<1x8x32xf32>
    tpu.vector_store %arg3[%c0_14, %c0_15, %c0_16], %31 {strides = array<i32>} : memref<1x9x32xf32, #tpu.memory_space<vmem>>, vector<1x8x32xf32>,
    %32 = vector.broadcast %7 : vector<1x32xf32> to vector<8x32xf32>
    %33 = arith.mulf %28, %32 : vector<8x32xf32>
    %cst_17 = arith.constant dense<0.000000e+00> : vector<8xf32>
    %34 = vector.multi_reduction <add>, %33, %cst_17 [1] : vector<8x32xf32> to vector<8xf32>
    %35 = vector.shape_cast %34 : vector<8xf32> to vector<8x1xf32>
    %36 = vector.extract_strided_slice %9 {offsets = [0, 256], sizes = [1, 1], strides = [1, 1]} : vector<1x384xf32> to vector<1x1xf32>
    %37 = vector.broadcast %36 : vector<1x1xf32> to vector<8x1xf32>
    %38 = arith.addf %35, %37 : vector<8x1xf32>
    %39 = math.tanh %38 : vector<8x1xf32>
    %40 = math.exp %39 : vector<8x1xf32>
    %cst_18 = arith.constant dense<0.000000e+00> : vector<1xf32>
    %41 = vector.multi_reduction <add>, %40, %cst_18 [0] : vector<8x1xf32> to vector<1xf32>
    %42 = vector.shape_cast %41 : vector<1xf32> to vector<1x1xf32>
    %43 = vector.broadcast %42 : vector<1x1xf32> to vector<8x1xf32>
    %44 = arith.divf %40, %43 : vector<8x1xf32>
    %45 = vector.broadcast %44 : vector<8x1xf32> to vector<8x32xf32>
    %46 = arith.mulf %45, %28 : vector<8x32xf32>
    %cst_19 = arith.constant dense<0.000000e+00> : vector<32xf32>
    %47 = vector.multi_reduction <add>, %46, %cst_19 [0] : vector<8x32xf32> to vector<32xf32>
    %48 = vector.shape_cast %47 : vector<32xf32> to vector<1x32xf32>
    %c0_20 = arith.constant 0 : index
    %c8 = arith.constant 8 : index
    %c0_21 = arith.constant 0 : index
    %49 = vector.load %arg3[%c0_20, %c8, %c0_21] : memref<1x9x32xf32, #tpu.memory_space<vmem>>, vector<1x1x32xf32>
    %50 = vector.shape_cast %49 : vector<1x1x32xf32> to vector<1x32xf32>
    %51 = vector.shape_cast %48 : vector<1x32xf32> to vector<1x1x32xf32>
    tpu.vector_store %arg3[%c0_20, %c8, %c0_21], %51 {strides = array<i32>} : memref<1x9x32xf32, #tpu.memory_space<vmem>>, vector<1x1x32xf32>,
    return
  }
  func.func @transform_0(%arg0: i32) -> (i32, i32, i32) {
    %c0_i32 = arith.constant 0 : i32
    %c0_i32_0 = arith.constant 0 : i32
    %c0_i32_1 = arith.constant 0 : i32
    return %arg0, %c0_i32, %c0_i32_0 : i32, i32, i32
  }
  func.func @transform_1(%arg0: i32) -> (i32, i32) {
    %c0_i32 = arith.constant 0 : i32
    %c0_i32_0 = arith.constant 0 : i32
    %c0_i32_1 = arith.constant 0 : i32
    return %c0_i32, %c0_i32_0 : i32, i32
  }
  func.func @transform_2(%arg0: i32) -> (i32, i32, i32) {
    %c0_i32 = arith.constant 0 : i32
    %c0_i32_0 = arith.constant 0 : i32
    %c0_i32_1 = arith.constant 0 : i32
    return %arg0, %c0_i32, %c0_i32_0 : i32, i32, i32
  }
}

</mosaic_0001>

<bundles_post_ra>
// kernel: explorer_forward.1
= control target key start
LH: loop header
LB: loop body
LE: loop exit
PB: predicated region body
PF: predicated region fallthrough
CT: control target
= control target key end

     0   :  { %7 = vsyncpa [#allocation3], 0  ;;  %s376_s12 = smov [#allocation2]   ;;  %s377_s14 = smov 384   ;;  %s432_s0 = inlined_call_operand.vmem [shape: f32[1,17,32], index: 0, kind: input, shape index: {}]   ;;  %s433_s1 = inlined_call_operand.hbm [shape: f32[66,384], index: 1, kind: input, shape index: {}]   ;;  %s434_s2 = inlined_call_operand.vmem [shape: f32[1,9,32], index: 2, kind: output, shape index: {}]  }
   0x1   :  { %s14_s11 = sshll.u32 %s433_s1, 4  ;;  %s16_s13 = sshll.u32 %s376_s12, 4  ;;  %s15_s11 = int_to_ptr.hbm [resolvable:$true] %s14_s11  ;;  %s17_s13 = int_to_ptr.vmem [resolvable:$true] %s16_s13 }
   0x2   :  { %s378_s15 = smov 24  }
   0x3   :  { %22 = dma.hbm_to_vmem [thread:$0]  %s15_s11, 3456, %s17_s13, [#allocation3], %s377_s14, %s377_s14, %s378_s15  }
   0x4   :  { %374 = dma.done.wait [#allocation3], 3456  }
   0x5   :  { %375 = vsyncadd [#allocation3], 4294963840  ;;  %v36_v0 = vld [vmem:[#allocation2 + $0x48] sm:$0xff]  ;;  %v34_v2 = vld [vmem:[#allocation2 + $0x30] sm:$0xff]  ;;  %vm60_vm0 = vcmask 261120   ;;  %vm160_vm1 = vcmask 64512  }
   0x6   :  { %v47_v1 = vld [vmem:[#allocation2 + $0xa8] sm:$0xff]  ;;  %143 = vmatpush.msra.mxu3 %v36_v0  ;;  %v44_v3 = vld [vmem:[#allocation2 + $0x90] sm:$0xff]  ;;  %v32_v4 = vld [vmem:[#allocation2 + $0x18] sm:$0xff]  ;;  %vm218_vm6 = vcmask 130048   ;;  %vm277_vm7 = vcmask 7168   ;;  %vm313_vm12 = vcmask 253952  }
   0x7   :  { %76 = vmatpush.msra.mxu0 %v47_v1  ;;  %v41_v5 = vld [vmem:[#allocation2 + $0x78] sm:$0xff]  ;;  %v30_v6 = vld [vmem:[#allocation2] sm:$0xff]  ;;  %v404_v9 = vld [vmem:[%s432_s0 + $0x10] sm:$0x1] }
   0x8   :  { %144 = vmatpush.msra.mxu3 %v34_v2  ;;  %v38_v7 = vld [vmem:[#allocation2 + $0x60] sm:$0xff]  ;;  %v28_v10 = vld [vmem:[%s432_s0 + $0x8] sm:$0xff]  ;;  %v48_v47 = vld [vmem:[#allocation2 + $0xb0] sm:$0xff] }
   0x9   :  { %77 = vmatpush.msra.mxu0 %v44_v3  ;;  %v27_v8 = vld [vmem:[%s432_s0] sm:$0xff]  ;;  %v45_v48 = vld [vmem:[#allocation2 + $0x98] sm:$0xff]  ;;  %96 = vmatpush.msra.mxu1 %v48_v47  ;;  %v39_v50 = vld [vmem:[#allocation2 + $0x68] sm:$0xff] }
   0xa   :  { %145 = vmatpush.msra.mxu3 %v32_v4  ;;  %v413_v11 = vld [vmem:[#allocation2 + $0xc0] ss:$8 sm:$0x7]  ;;  %v35_v52 = vld [vmem:[#allocation2 + $0x38] sm:$0xff]  ;;  %v52_v3 = vld [vmem:[#allocation2 + $0xc1] ss:$0 sm:$0xff] }
   0xb   :  { %78 = vmatpush.msra.mxu0 %v41_v5  ;;  %v54_v12 = vperm.slane %v413_v11, 0  ;;  %v42_v49 = vld [vmem:[#allocation2 + $0x80] sm:$0xff]  ;;  %97 = vmatpush.msra.mxu1 %v45_v48  ;;  %v37_v51 = vld [vmem:[#allocation2 + $0x50] sm:$0xff]  ;;  %v31_v54 = vld [vmem:[#allocation2 + $0x8] sm:$0xff]  ;;  %v55_v62 = vperm.slane %v413_v11, 1 }
   0xc   :  { %146 = vmatpush.msra.mxu3 %v30_v6  ;;  %v33_v53 = vld [vmem:[#allocation2 + $0x20] sm:$0xff]  ;;  %v49_v56 = vld [vmem:[#allocation2 + $0xb8] sm:$0xff]  ;;  %v43_v58 = vld [vmem:[#allocation2 + $0x88] sm:$0xff] }
   0xd   :  { %79 = vmatpush.msra.mxu0 %v38_v7  ;;  %323 = vmatmul.msk.f32.vlgmr.msra.gmra.mxu3 %vm60_vm0, %v27_v8  ;;  %v46_v57 = vld [vmem:[#allocation2 + $0xa0] sm:$0xff]  ;;  %v40_v59 = vld [vmem:[#allocation2 + $0x70] sm:$0xff]  ;;  %v56_v7 = vperm.slane %v413_v11, 2 }
   0xe   :  { %320 = vmatmul.msk.f32.vlgmr.msra.gmra.mxu0 %vm60_vm0, %v404_v9  ;;  %98 = vmatpush.msra.mxu1 %v42_v49 }
   0xf   :  { %236 = vmatpush.msrb.mxu0 %v28_v10  ;;  %116 = vmatpush.msra.mxu2 %v49_v56 }
  0x10   :  { %99 = vmatpush.msra.mxu1 %v39_v50 }
  0x11   :  { %237 = vmatpush.msrb.mxu0 %v27_v8  ;;  %321 = vmatmul.msk.f32.vlgmr.msra.gmra.mxu1 %vm60_vm0, %v404_v9 }
  0x12   :  { %258 = vmatpush.msrb.mxu1 %v37_v51  ;;  %117 = vmatpush.msra.mxu2 %v46_v57 }
  0x14   :  { %259 = vmatpush.msrb.mxu1 %v35_v52  ;;  %118 = vmatpush.msra.mxu2 %v43_v58 }
  0x15   :  { %324 = vmatmul.msk.f32.gmra.mxu3 %vm60_vm0, %v28_v10 }
  0x16   :  { %260 = vmatpush.msrb.mxu1 %v33_v53  ;;  %119 = vmatpush.msra.mxu2 %v40_v59 }
  0x17   :  { %322 = vmatmul.msk.f32.vlgmr.msra.gmra.mxu2 %vm60_vm0, %v404_v9 }
  0x18   :  { %261 = vmatpush.msrb.mxu1 %v31_v54 }
  0x8b   :  { %v81_v13 = vpop.f32.mrf.mxu0 }
  0x8c   :  { %v82_v14 = vadd.f32 %v81_v13, %v54_v12 }
  0x8e   :  { %v124_v15 = vperm.slane %v82_v14, 0  ;;  %v101_v61 = vpop.f32.mrf.mxu1  ;;  %v379_v14 = vmov 0  }
  0x8f   :  { %v102_v63 = vadd.f32 %v101_v61, %v55_v62  ;;  %332 = vset.pattern.permute.xlu1 %v379_v14 }
  0x90   :  { %v148_v16 = vpop.f32.mrf.mxu3 }
  0x91   :  { %v149_v17 = vadd.f32 %v148_v16, %v124_v15  ;;  %v242_v0 = vperm.slane %v102_v63, 0 }
  0x93   :  { %334 = vtanh.f32 %v149_v17 }
  0x98   :  { %v151_v18 = vpop.f32.mrf.mxu3 }
  0x99   :  { %v152_v19 = vadd.f32 %v151_v18, %v124_v15  ;;  %v335_v20 = vpop.eup %334 }
  0x9a   :  { %v156_v21 = vmul.f32 1.442695, %v335_v20  ;;  %v121_v8 = vpop.f32.mrf.mxu2 }
  0x9b   :  { %336 = vtanh.f32 %v152_v19  ;;  %v122_v9 = vadd.f32 %v121_v8, %v56_v7 }
  0x9c   :  { %338 = vpow2.f32 %v156_v21 }
  0x9d   :  { %v272_v10 = vperm.slane %v122_v9, 0 }
  0xa1   :  { %v337_v22 = vpop.eup %336 }
  0xa2   :  { %v158_v23 = vmul.f32 1.442695, %v337_v22  ;;  %v339_v24 = vpop.eup %338 }
  0xa3   :  { %v161_v26 = vsel %vm160_vm1, %v339_v24, 0.0 }
  0xa4   :  { %340 = vpow2.f32 %v158_v23 }
  0xaa   :  { %v341_v25 = vpop.eup %340 }
  0xab   :  { %v162_v27 = vsel %vm160_vm1, %v341_v25, 0.0 }
  0xac   :  { %v163_v28 = vadd.f32 %v162_v27, %v161_v26 }
  0xae   :  { %v164_v29 = vrot.slane %v163_v28, 4 }
  0xb0   :  { %v165_v30 = vadd.f32 %v164_v29, %v163_v28 }
  0xb2   :  { %v166_v31 = vrot.slane %v165_v30, 2 }
  0xb4   :  { %v167_v32 = vadd.f32 %v166_v31, %v165_v30 }
  0xb6   :  { %v168_v33 = vrot.slane %v167_v32, 1 }
  0xb8   :  { %v169_v34 = vadd.f32 %v168_v33, %v167_v32 }
  0xba   :  { %342 = vrcp.f32 %v169_v34  ;;  %v181_v38 = vand.u32 2147483648, %v169_v34  ;;  %v179_v40 = vand.u32 2147483647, %v169_v34  ;;  %vm175_vm3 = vweird.f32 %v169_v34 }
  0xbc   :  { %v182_v42 = vor.u32 1.1754944e-38, %v181_v38  ;;  %vm180_vm5 = vcmp.eq.f32.partialorder %v179_v40, 8.507059e+37 }
  0xc0   :  { %v343_v35 = vpop.eup %342 }
  0xc1   :  { %v171_v36 = vmul.f32 %v343_v35, %v169_v34  ;;  %vm176_vm2 = vweird.f32 %v343_v35 }
  0xc2   :  { %vm177_vm4 = vmor %vm175_vm3, %vm176_vm2 }
  0xc3   :  { %v172_v37 = vsub.f32 1.0, %v171_v36 }
  0xc5   :  { %v173_v39 = vmul.f32 %v343_v35, %v172_v37 }
  0xc7   :  { %v174_v41 = vadd.f32 %v343_v35, %v173_v39 }
  0xc9   :  { %v178_v43 = vsel %vm177_vm4, %v343_v35, %v174_v41 }
  0xca   :  { %v183_v44 = vsel %vm180_vm5, %v182_v42, %v178_v43 }
  0xcb   :  { %v184_v45 = vmul.f32 %v339_v24, %v183_v44  ;;  %v185_v46 = vmul.f32 %v341_v25, %v183_v44 }
  0xcd   :  { %186 = vxpose.xlu0.b32.start [1/2] (short) (narrow) %v184_v45, 8 }
  0xd5   :  { %187 = vxpose.xlu0.b32.end [2/2] (short) (narrow) %v185_v46, 8 }
 0x13c   :  { %333 = vset.pattern.permute.xlu0 %v379_v14 }
 0x171   :  { %v202_v55 = vpop.trf.xlu0 }
 0x172   :  { %325 = vmatmul.msk.f32.vlgmr.msrb.gmra.mxu0 %vm218_vm6, %v202_v55 }
 0x1ef   :  { %v239_v60 = vpop.f32.mrf.mxu0 }
 0x1f0   :  { %326 = vmatmul.msk.f32.vlgmr.msrb.gmra.mxu1 %vm60_vm0, %v239_v60 }
 0x26d   :  { %v263_v1 = vpop.f32.mrf.mxu1 }
 0x26e   :  { %v264_v2 = vadd.f32 %v263_v1, %v242_v0 }
 0x270   :  { %v266_v4 = vmax.f32 %v264_v2, 0.0 }
 0x272   :  { %267 = vst.msk [vmem:[%s434_s2] sm:$0xff] %vm60_vm0, %v266_v4  ;;  %v268_v5 = vmul.f32 %v266_v4, %v52_v3 }
 0x274   :  { %v269_v6 = vsel %vm60_vm0, %v268_v5, 0.0 }
 0x275   :  { %270 = vadd.xlane.f32.xlu1 %v269_v6 }
 0x2e8   :  { %v271_v12 = vpop.xlane.xlu1 %270 }
 0x2e9   :  { %v273_v13 = vadd.f32 %v272_v10, %v271_v12 }
 0x2eb   :  { %344 = vtanh.f32 %v273_v13 }
 0x2f1   :  { %v345_v15 = vpop.eup %344 }
 0x2f2   :  { %v275_v16 = vmul.f32 1.442695, %v345_v15 }
 0x2f4   :  { %346 = vpow2.f32 %v275_v16 }
 0x2fa   :  { %v347_v17 = vpop.eup %346 }
 0x2fb   :  { %v278_v18 = vsel %vm277_vm7, %v347_v17, 0.0 }
 0x2fc   :  { %v279_v19 = vrot.slane %v278_v18, 4 }
 0x2fe   :  { %v280_v20 = vadd.f32 %v279_v19, %v278_v18 }
 0x300   :  { %v281_v21 = vrot.slane %v280_v20, 2 }
 0x302   :  { %v282_v22 = vadd.f32 %v281_v21, %v280_v20 }
 0x304   :  { %v283_v11 = vrot.slane %v282_v22, 1 }
 0x306   :  { %v284_v23 = vadd.f32 %v283_v11, %v282_v22 }
 0x308   :  { %348 = vrcp.f32 %v284_v23  ;;  %v296_v27 = vand.u32 2147483648, %v284_v23  ;;  %v294_v29 = vand.u32 2147483647, %v284_v23  ;;  %vm290_vm9 = vweird.f32 %v284_v23 }
 0x30a   :  { %v297_v31 = vor.u32 1.1754944e-38, %v296_v27  ;;  %vm295_vm11 = vcmp.eq.f32.partialorder %v294_v29, 8.507059e+37 }
 0x30e   :  { %v349_v24 = vpop.eup %348 }
 0x30f   :  { %v286_v25 = vmul.f32 %v349_v24, %v284_v23  ;;  %vm291_vm8 = vweird.f32 %v349_v24 }
 0x310   :  { %vm292_vm10 = vmor %vm290_vm9, %vm291_vm8 }
 0x311   :  { %v287_v26 = vsub.f32 1.0, %v286_v25 }
 0x313   :  { %v288_v28 = vmul.f32 %v349_v24, %v287_v26 }
 0x315   :  { %v289_v30 = vadd.f32 %v349_v24, %v288_v28 }
 0x317   :  { %v293_v32 = vsel %vm292_vm10, %v349_v24, %v289_v30 }
 0x318   :  { %v298_v33 = vsel %vm295_vm11, %v297_v31, %v293_v32 }
 0x319   :  { %v299_v34 = vmul.f32 %v347_v17, %v298_v33 }
 0x31b   :  { %302 = vperm.xlu1 %332, %v299_v34  }
 0x38d   :  { %v303_v35 = vpop.permute.xlu1 %302 }
 0x38e   :  { %v305_v36 = vmul.f32 %v303_v35, %v266_v4 }
 0x390   :  { %v306_v37 = vsel %vm60_vm0, %v305_v36, 0.0 }
 0x391   :  { %v307_v38 = vrot.slane %v306_v37, 4 }
 0x393   :  { %v308_v39 = vadd.f32 %v307_v38, %v306_v37 }
 0x395   :  { %v309_v40 = vrot.slane %v308_v39, 2 }
 0x397   :  { %v310_v41 = vadd.f32 %v309_v40, %v308_v39 }
 0x399   :  { %v311_v42 = vrot.slane %v310_v41, 1 }
 0x39b   :  { %v312_v43 = vadd.f32 %v311_v42, %v310_v41 }
 0x39d   :  { %314 = vst.msk [vmem:[%s434_s2 + $0x8] sm:$0x1] %vm313_vm12, %v312_v43 }
 0x39e   :  { %319 = vsyncpa [#allocation3], 1 }

</bundles_post_ra>
